<compile_context>
chip_gen: v7x
topology: tpu7x:2x2x1
jax: 0.10.0
libtpu: 0.0.40
codegen_flags: <defaults>
</compile_context>

<pallas_src>
import jax
import jax.numpy as jnp
from jax.experimental import pallas as pl
from jax.experimental.pallas import tpu as pltpu


# ---------------- parameter setup (plain JAX glue) ----------------

def _gaussian_1d(window_size: int, sigma: float) -> jnp.ndarray:
    x = jnp.arange(window_size, dtype=jnp.float32)
    g = jnp.exp(-((x - window_size // 2) ** 2) / (2.0 * sigma ** 2))
    return g / jnp.sum(g)


def _band_matrix(n: int, g: jnp.ndarray, window_size: int) -> jnp.ndarray:
    """M[i, j] = g[j - i + half] if |j - i| <= half else 0  (zero-padded conv)."""
    half = window_size // 2
    i = jnp.arange(n)[:, None]
    j = jnp.arange(n)[None, :]
    d = j - i + half
    valid = (d >= 0) & (d < window_size)
    d_clipped = jnp.clip(d, 0, window_size - 1)
    return jnp.where(valid, g[d_clipped], 0.0).astype(jnp.float32)


def _vmem_bytes_estimate(cb: int, H: int, W: int, in_bytes: int, mm_bytes: int) -> int:
    """Rough per-step VMEM budget for the kernel working set."""
    rows = cb * H
    return int(
        4 * rows * W * in_bytes                   # x1, x2 blocks, double-buffered
        + 2 * (rows * rows + W * W) * mm_bytes    # kron(I_cb, A) and Bt (double-buffered)
        + 5 * rows * W * mm_bytes                 # conv operands in matmul dtype
        + 14 * rows * W * 4                       # f32 conv outputs + SSIM temps (headroom)
        + 4 * cb * 8 * W * 4                      # partial-sum output blocks
    )


def _pick_channel_block(nc: int, H: int, W: int, in_bytes: int, mm_bytes: int,
                        vmem_budget: int, max_rows: int = 256) -> int:
    """Channels per grid step.

    Largest divisor of nc such that:
      * cb*H <= max_rows  (keeps kron(I_cb, A) tiny; real images -> cb = 1),
      * the grid keeps >= 2 steps when nc >= 2 (v7x megacore sharding + pipelining),
      * the per-step working set fits the VMEM budget.
    cb = 1 is always a legal fallback (no kron at all in that case).
    """
    best = 1
    for cb in range(1, nc + 1):
        if nc % cb:
            continue
        if cb > 1:
            if cb * H > max_rows:
                continue
            if nc >= 2 and nc // cb < 2:
                continue
            if _vmem_bytes_estimate(cb, H, W, in_bytes, mm_bytes) > vmem_budget:
                continue
        best = cb
    return best


# ---------------- Pallas kernel (hot path) ----------------

def _ssim_kernel(x1_ref, x2_ref, ag_ref, bt_ref, out_ref):
    # x1/x2: (cb, H, W) natural-layout channel block.
    # ag_ref: (cb*H, cb*H) = kron(I_cb, A)  (== A when cb == 1), grid-invariant.
    # bt_ref: (W, W) transposed 1-D Gaussian band matrix, grid-invariant.
    cb, H, W = x1_ref.shape
    rows = cb * H
    mm = ag_ref.dtype

    # Collapse channels into sublanes (layout-trivial: minor dim W untouched) and
    # build the matmul operands directly in the MXU dtype.
    x1 = x1_ref[...].reshape(rows, W).astype(mm)
    x2 = x2_ref[...].reshape(rows, W).astype(mm)

    def conv(z_mm):
        # Separable Gaussian blur: W-direction via shared Bt (no kron), then
        # H-direction via the (tiny / degenerate) block-diagonal kron(I_cb, A).
        u = jnp.dot(z_mm, bt_ref[...], preferred_element_type=jnp.float32)
        return jnp.dot(ag_ref[...], u.astype(mm), preferred_element_type=jnp.float32)

    mu1 = conv(x1)
    mu2 = conv(x2)
    e11 = conv(x1 * x1)
    e22 = conv(x2 * x2)
    e12 = conv(x1 * x2)

    mu1_sq = mu1 * mu1
    mu2_sq = mu2 * mu2
    mu1_mu2 = mu1 * mu2
    sigma1_sq = e11 - mu1_sq
    sigma2_sq = e22 - mu2_sq
    sigma12 = e12 - mu1_mu2

    c1 = 0.01 ** 2
    c2 = 0.03 ** 2
    # Exact divide (not pl.reciprocal(approx=True)): sigma terms are
    # cancellation-sensitive and we want f32-reference-level accuracy.
    ssim_map = ((2.0 * mu1_mu2 + c1) * (2.0 * sigma12 + c2)) / (
        (mu1_sq + mu2_sq + c1) * (sigma1_sq + sigma2_sq + c2)
    )

    # Per-channel partial sums folded to 8 sublanes via reshape-and-sum (bounded
    # live ranges); lanes stay intact, the wrapper does the final tiny reduce.
    h_pad = ((H + 7) // 8) * 8
    parts = []
    for c in range(cb):
        blk = ssim_map[c * H:(c + 1) * H, :]
        if h_pad != H:
            blk = jnp.concatenate(
                [blk, jnp.zeros((h_pad - H, W), jnp.float32)], axis=0)
        parts.append(blk.reshape(h_pad // 8, 8, W).sum(axis=0))    # (8, W)
    out_ref[...] = jnp.concatenate(parts, axis=0)                  # (cb*8, W)


# ---------------- wrapper ----------------

def ssim_pallas(img1, img2, window_size: int = 11, size_average: bool = True,
                matmul_dtype=None):
    assert img1.shape == img2.shape
    N, C, H, W = img1.shape
    nc = N * C

    # MXU dtype: follow the input dtype (bf16 inputs -> bf16 matmuls on v6e/v7x;
    # f32 inputs -> f32 matmuls, matching the PyTorch/f32 reference).  Override
    # with matmul_dtype=jnp.bfloat16 for the fast path regardless of input dtype.
    if matmul_dtype is None:
        matmul_dtype = jnp.bfloat16 if img1.dtype == jnp.bfloat16 else jnp.float32

    in_bytes = jnp.dtype(img1.dtype).itemsize
    mm_bytes = jnp.dtype(matmul_dtype).itemsize

    # Per-generation VMEM budget (v7x = 64 MiB per TC is the tightest).
    vmem_phys = 64 * 1024 * 1024
    try:
        vmem_phys = int(pltpu.get_tpu_info().vmem_capacity_bytes)
    except Exception:
        pass
    vmem_budget = int(vmem_phys * 0.45)

    cb = _pick_channel_block(nc, H, W, in_bytes, mm_bytes, vmem_budget)
    num_blocks = nc // cb
    rows = cb * H

    # Conv matrices (grid-invariant, small).
    g = _gaussian_1d(window_size, 1.5)
    A = _band_matrix(H, g, window_size)                       # (H, H), acts on rows
    Bt = _band_matrix(W, g, window_size).T                    # (W, W), acts on cols
    AG = (jnp.kron(jnp.eye(cb, dtype=jnp.float32), A) if cb > 1 else A)
    AG = AG.astype(matmul_dtype)
    Bt = Bt.astype(matmul_dtype)

    # Natural layout, no transpose, no dtype cast: a free reshape only.
    x1 = img1.reshape(nc, H, W)
    x2 = img2.reshape(nc, H, W)

    est = _vmem_bytes_estimate(cb, H, W, in_bytes, mm_bytes)
    vmem_limit = int(min(max(2 * est, 32 * 1024 * 1024), int(0.75 * vmem_phys)))

    partial = pl.pallas_call(
        _ssim_kernel,
        out_shape=jax.ShapeDtypeStruct((num_blocks * cb * 8, W), jnp.float32),
        grid_spec=pltpu.PrefetchScalarGridSpec(
            num_scalar_prefetch=0,
            grid=(num_blocks,),
            in_specs=[
                pl.BlockSpec((cb, H, W), lambda i: (i, 0, 0)),
                pl.BlockSpec((cb, H, W), lambda i: (i, 0, 0)),
                pl.BlockSpec((rows, rows), lambda i: (0, 0)),   # grid-invariant, DMA'd once
                pl.BlockSpec((W, W), lambda i: (0, 0)),         # grid-invariant, DMA'd once
            ],
            out_specs=pl.BlockSpec((cb * 8, W), lambda i: (i, 0)),
        ),
        compiler_params=pltpu.CompilerParams(
            dimension_semantics=("parallel",),   # independent channel blocks (megacore)
            vmem_limit_bytes=vmem_limit,
        ),
    )(x1, x2, AG, Bt)

    # partial: (nc*8, W), channel-ordered. Finish the tiny reduction on host side.
    per_chan = partial.reshape(nc, 8, W).sum(axis=(1, 2))       # (nc,)
    if size_average:
        return per_chan.sum() / (N * C * H * W)
    # size_average=False: per-image mean over (C, H, W), like .mean(1).mean(1).mean(1).
    return per_chan.reshape(N, C).sum(axis=1) / (C * H * W)


# ---------------- pure-JAX reference (for correctness check) ----------------

def ssim_ref_map(img1, img2, window_size: int = 11):
    N, C, H, W = img1.shape
    g = _gaussian_1d(window_size, 1.5)
    w2d = jnp.outer(g, g)
    window = jnp.broadcast_to(w2d, (C, 1, window_size, window_size))
    pad = window_size // 2

    def conv(x):
        return jax.lax.conv_general_dilated(
            x, window, (1, 1), [(pad, pad), (pad, pad)],
            dimension_numbers=("NCHW", "OIHW", "NCHW"),
            feature_group_count=C)

    mu1, mu2 = conv(img1), conv(img2)
    mu1_sq, mu2_sq, mu1_mu2 = mu1 * mu1, mu2 * mu2, mu1 * mu2
    sigma1_sq = conv(img1 * img1) - mu1_sq
    sigma2_sq = conv(img2 * img2) - mu2_sq
    sigma12 = conv(img1 * img2) - mu1_mu2
    C1, C2 = 0.01 ** 2, 0.03 ** 2
    return ((2 * mu1_mu2 + C1) * (2 * sigma12 + C2)) / (
        (mu1_sq + mu2_sq + C1) * (sigma1_sq + sigma2_sq + C2))


if __name__ == "__main__":
    key = jax.random.PRNGKey(0)
    k1, k2 = jax.random.split(key)
    N, C, H, W = 2, 4, 16, 16
    img1 = jax.random.uniform(k1, (N, C, H, W), dtype=jnp.float32)
    img2 = jax.random.uniform(k2, (N, C, H, W), dtype=jnp.float32)

    ref_map = ssim_ref_map(img1, img2)
    ref = jax.block_until_ready(jnp.mean(ref_map))

    # size_average=True (module default): scalar mean, f32 MXU path (reference-exact).
    out = jax.block_until_ready(ssim_pallas(img1, img2))
    assert jnp.allclose(out, ref, atol=1e-5, rtol=1e-5), (out, ref)

    # size_average=False: per-image mean over (C, H, W).
    out_per = jax.block_until_ready(ssim_pallas(img1, img2, size_average=False))
    ref_per = jax.block_until_ready(jnp.mean(ref_map, axis=(1, 2, 3)))
    assert jnp.allclose(out_per, ref_per, atol=1e-5, rtol=1e-5), (out_per, ref_per)

    # bf16 MXU fast path (v6e/v7x): exercise it and sanity-check against the f32
    # reference with a tolerance appropriate for bf16-rounded conv inputs.
    out_bf16 = jax.block_until_ready(
        ssim_pallas(img1, img2, matmul_dtype=jnp.bfloat16))
    assert bool(jnp.isfinite(out_bf16)), out_bf16
    assert abs(float(out_bf16) - float(ref)) < 0.05, (out_bf16, ref)

    print("KERNEL_OK")
</pallas_src>

<mosaic_0001>
module attributes {stable_mosaic.version = 11 : i64} {
  func.func @_ssim_kernel(%arg0: i32, %arg1: memref<4x16x16xf32, #tpu.memory_space<vmem>>, %arg2: memref<4x16x16xf32, #tpu.memory_space<vmem>>, %arg3: memref<64x64xf32, #tpu.memory_space<vmem>>, %arg4: memref<16x16xf32, #tpu.memory_space<vmem>>, %arg5: memref<32x16xf32, #tpu.memory_space<vmem>>) attributes {dimension_semantics = [#tpu.dimension_semantics<parallel>], iteration_bounds = array<i64: 2>, scalar_prefetch = 0 : i64, scratch_operands = 0 : i64, tpu.core_type = #tpu.core_type<tc>, window_params = [{transform_indices = @transform_0, window_bounds = array<i64: 4, 16, 16>}, {transform_indices = @transform_1, window_bounds = array<i64: 4, 16, 16>}, {pipeline_mode = #tpu.pipeline_mode<synchronous>, transform_indices = @transform_2, window_bounds = array<i64: 64, 64>}, {pipeline_mode = #tpu.pipeline_mode<synchronous>, transform_indices = @transform_3, window_bounds = array<i64: 16, 16>}, {transform_indices = @transform_4, window_bounds = array<i64: 32, 16>}]} {
    %c0 = arith.constant 0 : index
    %c0_0 = arith.constant 0 : index
    %c0_1 = arith.constant 0 : index
    %0 = vector.load %arg1[%c0, %c0_0, %c0_1] : memref<4x16x16xf32, #tpu.memory_space<vmem>>, vector<4x16x16xf32>
    %1 = vector.shape_cast %0 : vector<4x16x16xf32> to vector<64x16xf32>
    %c0_2 = arith.constant 0 : index
    %c0_3 = arith.constant 0 : index
    %c0_4 = arith.constant 0 : index
    %2 = vector.load %arg2[%c0_2, %c0_3, %c0_4] : memref<4x16x16xf32, #tpu.memory_space<vmem>>, vector<4x16x16xf32>
    %3 = vector.shape_cast %2 : vector<4x16x16xf32> to vector<64x16xf32>
    %c0_5 = arith.constant 0 : index
    %c0_6 = arith.constant 0 : index
    %4 = vector.load %arg4[%c0_5, %c0_6] : memref<16x16xf32, #tpu.memory_space<vmem>>, vector<16x16xf32>
    %cst = arith.constant dense<0.000000e+00> : vector<64x16xf32>
    %5 = tpu.matmul %1, %4, %cst {dimension_numbers = #tpu.dot_dimension_numbers<[1], [0], [0], [1], [0, 0, 1, 1], [], []>} : vector<64x16xf32>, vector<16x16xf32>, vector<64x16xf32> -> vector<64x16xf32>
    %c0_7 = arith.constant 0 : index
    %c0_8 = arith.constant 0 : index
    %6 = vector.load %arg3[%c0_7, %c0_8] : memref<64x64xf32, #tpu.memory_space<vmem>>, vector<64x64xf32>
    %cst_9 = arith.constant dense<0.000000e+00> : vector<64x16xf32>
    %7 = tpu.matmul %6, %5, %cst_9 {dimension_numbers = #tpu.dot_dimension_numbers<[1], [0], [0], [1], [0, 0, 1, 1], [], []>} : vector<64x64xf32>, vector<64x16xf32>, vector<64x16xf32> -> vector<64x16xf32>
    %c0_10 = arith.constant 0 : index
    %c0_11 = arith.constant 0 : index
    %8 = vector.load %arg4[%c0_10, %c0_11] : memref<16x16xf32, #tpu.memory_space<vmem>>, vector<16x16xf32>
    %cst_12 = arith.constant dense<0.000000e+00> : vector<64x16xf32>
    %9 = tpu.matmul %3, %8, %cst_12 {dimension_numbers = #tpu.dot_dimension_numbers<[1], [0], [0], [1], [0, 0, 1, 1], [], []>} : vector<64x16xf32>, vector<16x16xf32>, vector<64x16xf32> -> vector<64x16xf32>
    %c0_13 = arith.constant 0 : index
    %c0_14 = arith.constant 0 : index
    %10 = vector.load %arg3[%c0_13, %c0_14] : memref<64x64xf32, #tpu.memory_space<vmem>>, vector<64x64xf32>
    %cst_15 = arith.constant dense<0.000000e+00> : vector<64x16xf32>
    %11 = tpu.matmul %10, %9, %cst_15 {dimension_numbers = #tpu.dot_dimension_numbers<[1], [0], [0], [1], [0, 0, 1, 1], [], []>} : vector<64x64xf32>, vector<64x16xf32>, vector<64x16xf32> -> vector<64x16xf32>
    %12 = arith.mulf %1, %1 : vector<64x16xf32>
    %c0_16 = arith.constant 0 : index
    %c0_17 = arith.constant 0 : index
    %13 = vector.load %arg4[%c0_16, %c0_17] : memref<16x16xf32, #tpu.memory_space<vmem>>, vector<16x16xf32>
    %cst_18 = arith.constant dense<0.000000e+00> : vector<64x16xf32>
    %14 = tpu.matmul %12, %13, %cst_18 {dimension_numbers = #tpu.dot_dimension_numbers<[1], [0], [0], [1], [0, 0, 1, 1], [], []>} : vector<64x16xf32>, vector<16x16xf32>, vector<64x16xf32> -> vector<64x16xf32>
    %c0_19 = arith.constant 0 : index
    %c0_20 = arith.constant 0 : index
    %15 = vector.load %arg3[%c0_19, %c0_20] : memref<64x64xf32, #tpu.memory_space<vmem>>, vector<64x64xf32>
    %cst_21 = arith.constant dense<0.000000e+00> : vector<64x16xf32>
    %16 = tpu.matmul %15, %14, %cst_21 {dimension_numbers = #tpu.dot_dimension_numbers<[1], [0], [0], [1], [0, 0, 1, 1], [], []>} : vector<64x64xf32>, vector<64x16xf32>, vector<64x16xf32> -> vector<64x16xf32>
    %17 = arith.mulf %3, %3 : vector<64x16xf32>
    %c0_22 = arith.constant 0 : index
    %c0_23 = arith.constant 0 : index
    %18 = vector.load %arg4[%c0_22, %c0_23] : memref<16x16xf32, #tpu.memory_space<vmem>>, vector<16x16xf32>
    %cst_24 = arith.constant dense<0.000000e+00> : vector<64x16xf32>
    %19 = tpu.matmul %17, %18, %cst_24 {dimension_numbers = #tpu.dot_dimension_numbers<[1], [0], [0], [1], [0, 0, 1, 1], [], []>} : vector<64x16xf32>, vector<16x16xf32>, vector<64x16xf32> -> vector<64x16xf32>
    %c0_25 = arith.constant 0 : index
    %c0_26 = arith.constant 0 : index
    %20 = vector.load %arg3[%c0_25, %c0_26] : memref<64x64xf32, #tpu.memory_space<vmem>>, vector<64x64xf32>
    %cst_27 = arith.constant dense<0.000000e+00> : vector<64x16xf32>
    %21 = tpu.matmul %20, %19, %cst_27 {dimension_numbers = #tpu.dot_dimension_numbers<[1], [0], [0], [1], [0, 0, 1, 1], [], []>} : vector<64x64xf32>, vector<64x16xf32>, vector<64x16xf32> -> vector<64x16xf32>
    %22 = arith.mulf %1, %3 : vector<64x16xf32>
    %c0_28 = arith.constant 0 : index
    %c0_29 = arith.constant 0 : index
    %23 = vector.load %arg4[%c0_28, %c0_29] : memref<16x16xf32, #tpu.memory_space<vmem>>, vector<16x16xf32>
    %cst_30 = arith.constant dense<0.000000e+00> : vector<64x16xf32>
    %24 = tpu.matmul %22, %23, %cst_30 {dimension_numbers = #tpu.dot_dimension_numbers<[1], [0], [0], [1], [0, 0, 1, 1], [], []>} : vector<64x16xf32>, vector<16x16xf32>, vector<64x16xf32> -> vector<64x16xf32>
    %c0_31 = arith.constant 0 : index
    %c0_32 = arith.constant 0 : index
    %25 = vector.load %arg3[%c0_31, %c0_32] : memref<64x64xf32, #tpu.memory_space<vmem>>, vector<64x64xf32>
    %cst_33 = arith.constant dense<0.000000e+00> : vector<64x16xf32>
    %26 = tpu.matmul %25, %24, %cst_33 {dimension_numbers = #tpu.dot_dimension_numbers<[1], [0], [0], [1], [0, 0, 1, 1], [], []>} : vector<64x64xf32>, vector<64x16xf32>, vector<64x16xf32> -> vector<64x16xf32>
    %27 = arith.mulf %7, %7 : vector<64x16xf32>
    %28 = arith.mulf %11, %11 : vector<64x16xf32>
    %29 = arith.mulf %7, %11 : vector<64x16xf32>
    %30 = arith.subf %16, %27 : vector<64x16xf32>
    %31 = arith.subf %21, %28 : vector<64x16xf32>
    %32 = arith.subf %26, %29 : vector<64x16xf32>
    %cst_34 = arith.constant 2.000000e+00 : f32
    %33 = vector.broadcast %cst_34 : f32 to vector<64x16xf32>
    %34 = arith.mulf %33, %29 : vector<64x16xf32>
    %cst_35 = arith.constant 9.99999974E-5 : f32
    %35 = vector.broadcast %cst_35 : f32 to vector<64x16xf32>
    %36 = arith.addf %34, %35 : vector<64x16xf32>
    %cst_36 = arith.constant 2.000000e+00 : f32
    %37 = vector.broadcast %cst_36 : f32 to vector<64x16xf32>
    %38 = arith.mulf %37, %32 : vector<64x16xf32>
    %cst_37 = arith.constant 8.99999984E-4 : f32
    %39 = vector.broadcast %cst_37 : f32 to vector<64x16xf32>
    %40 = arith.addf %38, %39 : vector<64x16xf32>
    %41 = arith.mulf %36, %40 : vector<64x16xf32>
    %42 = arith.addf %27, %28 : vector<64x16xf32>
    %cst_38 = arith.constant 9.99999974E-5 : f32
    %43 = vector.broadcast %cst_38 : f32 to vector<64x16xf32>
    %44 = arith.addf %42, %43 : vector<64x16xf32>
    %45 = arith.addf %30, %31 : vector<64x16xf32>
    %cst_39 = arith.constant 8.99999984E-4 : f32
    %46 = vector.broadcast %cst_39 : f32 to vector<64x16xf32>
    %47 = arith.addf %45, %46 : vector<64x16xf32>
    %48 = arith.mulf %44, %47 : vector<64x16xf32>
    %49 = arith.divf %41, %48 : vector<64x16xf32>
    %50 = vector.extract_strided_slice %49 {offsets = [0, 0], sizes = [16, 16], strides = [1, 1]} : vector<64x16xf32> to vector<16x16xf32>
    %51 = vector.shape_cast %50 : vector<16x16xf32> to vector<2x8x16xf32>
    %cst_40 = arith.constant dense<0.000000e+00> : vector<8x16xf32>
    %52 = vector.multi_reduction <add>, %51, %cst_40 [0] : vector<2x8x16xf32> to vector<8x16xf32>
    %53 = vector.extract_strided_slice %49 {offsets = [16, 0], sizes = [16, 16], strides = [1, 1]} : vector<64x16xf32> to vector<16x16xf32>
    %54 = vector.shape_cast %53 : vector<16x16xf32> to vector<2x8x16xf32>
    %cst_41 = arith.constant dense<0.000000e+00> : vector<8x16xf32>
    %55 = vector.multi_reduction <add>, %54, %cst_41 [0] : vector<2x8x16xf32> to vector<8x16xf32>
    %56 = vector.extract_strided_slice %49 {offsets = [32, 0], sizes = [16, 16], strides = [1, 1]} : vector<64x16xf32> to vector<16x16xf32>
    %57 = vector.shape_cast %56 : vector<16x16xf32> to vector<2x8x16xf32>
    %cst_42 = arith.constant dense<0.000000e+00> : vector<8x16xf32>
    %58 = vector.multi_reduction <add>, %57, %cst_42 [0] : vector<2x8x16xf32> to vector<8x16xf32>
    %59 = vector.extract_strided_slice %49 {offsets = [48, 0], sizes = [16, 16], strides = [1, 1]} : vector<64x16xf32> to vector<16x16xf32>
    %60 = vector.shape_cast %59 : vector<16x16xf32> to vector<2x8x16xf32>
    %cst_43 = arith.constant dense<0.000000e+00> : vector<8x16xf32>
    %61 = vector.multi_reduction <add>, %60, %cst_43 [0] : vector<2x8x16xf32> to vector<8x16xf32>
    %62 = tpu.concatenate %52, %55, %58, %61 in 0 : vector<8x16xf32>, vector<8x16xf32>, vector<8x16xf32>, vector<8x16xf32> -> vector<32x16xf32>
    %c0_44 = arith.constant 0 : index
    %c0_45 = arith.constant 0 : index
    %63 = vector.load %arg5[%c0_44, %c0_45] : memref<32x16xf32, #tpu.memory_space<vmem>>, vector<32x16xf32>
    tpu.vector_store %arg5[%c0_44, %c0_45], %62 {strides = array<i32>} : memref<32x16xf32, #tpu.memory_space<vmem>>, vector<32x16xf32>,
    return
  }
  func.func @transform_0(%arg0: i32) -> (i32, i32, i32) {
    %c0_i32 = arith.constant 0 : i32
    %c0_i32_0 = arith.constant 0 : i32
    %c0_i32_1 = arith.constant 0 : i32
    return %arg0, %c0_i32, %c0_i32_0 : i32, i32, i32
  }
  func.func @transform_1(%arg0: i32) -> (i32, i32, i32) {
    %c0_i32 = arith.constant 0 : i32
    %c0_i32_0 = arith.constant 0 : i32
    %c0_i32_1 = arith.constant 0 : i32
    return %arg0, %c0_i32, %c0_i32_0 : i32, i32, i32
  }
  func.func @transform_2(%arg0: i32) -> (i32, i32) {
    %c0_i32 = arith.constant 0 : i32
    %c0_i32_0 = arith.constant 0 : i32
    %c0_i32_1 = arith.constant 0 : i32
    return %c0_i32, %c0_i32_0 : i32, i32
  }
  func.func @transform_3(%arg0: i32) -> (i32, i32) {
    %c0_i32 = arith.constant 0 : i32
    %c0_i32_0 = arith.constant 0 : i32
    %c0_i32_1 = arith.constant 0 : i32
    return %c0_i32, %c0_i32_0 : i32, i32
  }
  func.func @transform_4(%arg0: i32) -> (i32, i32) {
    %c0_i32 = arith.constant 0 : i32
    %c0_i32_0 = arith.constant 0 : i32
    return %arg0, %c0_i32 : i32, i32
  }
}

</mosaic_0001>

<bundles_post_ra>
// kernel: tpu_custom_call.1
= control target key start
LH: loop header
LB: loop body
LE: loop exit
PB: predicated region body
PF: predicated region fallthrough
CT: control target
= control target key end

     0   :  { %9 = vsyncpa [#allocation3], 0  ;;  %s3210_s0 = inlined_call_operand.hbm [shape: f32[8,16,16], index: 0, kind: input, shape index: {}]   ;;  %s3211_s1 = inlined_call_operand.hbm [shape: f32[8,16,16], index: 1, kind: input, shape index: {}]   ;;  %s3212_s2 = inlined_call_operand.hbm [shape: f32[64,64], index: 2, kind: input, shape index: {}]   ;;  %s3213_s3 = inlined_call_operand.hbm [shape: f32[16,16], index: 3, kind: input, shape index: {}]   ;;  %s3214_s4 = inlined_call_operand.vmem [shape: f32[64,16], index: 4, kind: output, shape index: {}]  }
   0x1   :  { %11 = vsyncpa [#allocation3 + $0x1], 0 }
   0x2   :  { %12 = vsyncpa [#allocation5], 0 }
   0x3   :  { %14 = vsyncpa [#allocation5 + $0x1], 0 }
   0x4   :  { %15 = vsyncpa [#allocation8], 0  ;;  %s2650_s15 = smov 0   ;;  %s2652_s16 = smov 0  }
   0x5   :  { %s2654_s17 = smov 0   ;;  %s2656_s18 = smov 0  }
   0x6 LB: > { %s2669_s19 = sadd.s32 4294967295, %s2617_s18   ;;  %p41_p0 = scmp.ne.s32.totalorder %s2609_s16, %s2605_s15  ;;  %s2617_s18 = sphi %s2656_s18, %s3232_s18   ;;  %s2613_s17 = sphi %s2654_s17, %s3231_s17   ;;  %s2609_s16 = sphi %s2652_s16, %s3230_s16   ;;  %s2605_s15 = sphi %s2650_s15, %s3229_s15  }
   0x7   : > { %p3215_p1 = scmp.eq.s32.totalorder %s2669_s19, 0  ;;  %p1809_p2 = scmp.ge.s32.totalorder %s2617_s18, 1 }
   0x8   : > { %p146_p3 = scmp.lt.s32.totalorder %s2617_s18, 3  ;;  %s2619_s22 = smov [#allocation6]  }
   0x9   : > { %p2677_p4 = por %p3215_p1, %p41_p0  ;;  %s158_s23 = sshll.u32 %s2619_s22, 4  ;;  %s159_s23 = int_to_ptr.vmem [resolvable:$true] %s158_s23 }
   0xa   : > { %p2681_p5 = pnand %p1809_p2, %p146_p3  ;;  %s2620_s25 = smov [#allocation7]  }
   0xb   : > { %s3218_s20 = scalar_select %p2677_p4, 1, 0 }
   0xc   : > { %s3219_s21 = scalar_select %p2681_p5, 1, 0 }
   0xd   : > { %p2384_p6 = pneg %p2681_p5  ;;  %s171_s26 = sshll.u32 %s2620_s25, 4  ;;  %s2693_s26 = int_to_ptr.vmem [resolvable:$true] %s171_s26 }
   0xe   : > { %s2455_s29 = scalar_lea.hbm %s3212_s2, 1024 }
   0xf   : > { %p2689_p7 = pnand %p2384_p6, %p3215_p1  ;;  %p2456_p8 = scmp.ne.s32.totalorder %s3212_s2, %s2455_s29 }
  0x10   : > { %p2462_p12 = scmp.lt.u32.totalorder %s2455_s29, %s3212_s2 }
  0x11   : > { %p2457_p9 = pneg %p2689_p7 }
  0x13   : > { %p2458_p10 = pnand %p2457_p9, %p2456_p8 }
  0x15   : > { %p2459_p11 = pneg %p2458_p10 }
  0x17   : > { %p2464_p13 = pnand %p2462_p12, %p2459_p11 }
  0x19   : > { %2467 = shalt.err (!%p2464_p13)
}
  0x1a   : > { %s2468_s8 = scalar_lea.vmem %s159_s23, 1024  ;;  %p2476_p6 = scmp.lt.s32.totalorder %s159_s23, %s159_s23 }
  0x1b   : > { %p2469_p0 = scmp.ne.s32.totalorder %s159_s23, %s2468_s8  ;;  %p2477_p1 = scmp.lt.s32.totalorder %s2468_s8, %s2468_s8 }
  0x1d   : > { %p2471_p2 = pnand %p2469_p0, %p2457_p9  ;;  %p2478_p4 = por %p2477_p1, %p2476_p6 }
  0x1f   : > { %p2472_p3 = pneg %p2471_p2 }
  0x21   : > { %p2479_p5 = pnand %p2478_p4, %p2472_p3 }
  0x23   : > { %2482 = shalt.err (!%p2479_p5)
}
  0x24   : > { %s2621_s9 = smov 128   ;;  %s2622_s10 = smov 8  }
  0x25   : > { %2387 = dma.hbm_to_vmem [thread:$0]  (!%p2689_p7), %s3212_s2, 1024, %s159_s23, [#allocation5], %s2621_s9, %s2621_s9, %s2622_s10  }
  0x26   : > { %s2483_s15 = scalar_lea.hbm %s3213_s3, 256 }
  0x27   : > { %p2484_p1 = scmp.ne.s32.totalorder %s3213_s3, %s2483_s15  ;;  %p2490_p8 = scmp.lt.u32.totalorder %s2483_s15, %s3213_s3 }
  0x29   : > { %p2486_p4 = pnand %p2484_p1, %p2457_p9 }
  0x2b   : > { %p2487_p5 = pneg %p2486_p4 }
  0x2d   : > { %p2492_p10 = pnand %p2490_p8, %p2487_p5 }
  0x2f   : > { %2495 = shalt.err (!%p2492_p10)
}
  0x30   : > { %s2496_s23 = scalar_lea.vmem %s2693_s26, 256  ;;  %p2504_p0 = scmp.lt.s32.totalorder %s2693_s26, %s2693_s26 }
  0x31   : > { %p2497_p11 = scmp.ne.s32.totalorder %s2693_s26, %s2496_s23  ;;  %p2505_p2 = scmp.lt.s32.totalorder %s2496_s23, %s2496_s23 }
  0x33   : > { %p2499_p12 = pnand %p2497_p11, %p2457_p9  ;;  %p2506_p3 = por %p2505_p2, %p2504_p0 }
  0x35   : > { %p2500_p13 = pneg %p2499_p12 }
  0x37   : > { %p2507_p6 = pnand %p2506_p3, %p2500_p13 }
  0x39   : > { %2510 = shalt.err (!%p2507_p6)
}
  0x3a   : > { %2390 = dma.hbm_to_vmem [thread:$0]  (!%p2689_p7), %s3213_s3, 256, %s2693_s26, [#allocation8], %s2621_s9, %s2621_s9, %s2622_s10  }
  0x3b   : > { %s2749_s5 = sadd.s32 1, %s2617_s18   ;;  %s28_s24 = sadd.s32 1, %s2613_s17 }
  0x3c   : > { %s25_s6 = ssub.s32 %s2617_s18, %s2749_s5  ;;  %p35_p9 = scmp.ne.s32.totalorder %s2613_s17, %s2609_s16 }
  0x3d   : > { %p26_p1 = scmp.eq.s32.totalorder %s25_s6, 0  ;;  %p36_p4 = scmp.eq.s32.totalorder %s2617_s18, 0 }
  0x3e   : > { %p2400_p5 = scmp.lt.s32.totalorder %s2617_s18, 2  ;;  %s185_s7 = sand.u32 1, %s2613_s17  }
  0x3f   : > { %s2760_s8 = scalar_select %p26_p1, %s2613_s17, %s28_s24  }
  0x40   : > { %p37_p8 = por %p36_p4, %p35_p9  ;;  %s2762_s11 = sshll.u32 %s185_s7, 6 }
  0x41   : > { %s1911_s12 = sshll.u32 %s2617_s18, 10  ;;  %s189_s15 = scalar_lea.vmem [#allocation2], %s2762_s11 }
  0x42   : > { %s2768_s26 = scalar_lea.hbm %s3210_s0, %s1911_s12  ;;  %s197_s22 = sshll.u32 %s189_s15, 4  ;;  %s2775_s22 = int_to_ptr.vmem [resolvable:$true] %s197_s22 }
  0x43   : > { %p2771_p7 = pnand %p2400_p5, %p37_p8  ;;  %s2780_s23 = scalar_lea.hbm %s3211_s1, %s1911_s12 }
  0x44   : > { %s2782_s29 = scalar_lea.sflag [#allocation3], %s185_s7  ;;  %s2511_s30 = scalar_lea.hbm %s2768_s26, 1024 }
  0x45   : > { %p2512_p10 = scmp.ne.s32.totalorder %s2768_s26, %s2511_s30  ;;  %p2513_p11 = pneg %p2771_p7 }
  0x46   : > { %s2516_s13 = scalar_lea.hbm %s3210_s0, 2048  ;;  %p2517_p0 = scmp.lt.u32.totalorder %s2768_s26, %s3210_s0 }
  0x47   : > { %p2514_p12 = pnand %p2513_p11, %p2512_p10  ;;  %p2518_p2 = scmp.lt.u32.totalorder %s2516_s13, %s2511_s30 }
  0x48   : > { %p2520_p6 = scmp.lt.u32.totalorder %s2511_s30, %s2768_s26 }
  0x49   : > { %p2515_p13 = pneg %p2514_p12  ;;  %p2519_p3 = por %p2518_p2, %p2517_p0 }
  0x4b   : > { %p2521_p9 = por %p2520_p6, %p2519_p3 }
  0x4d   : > { %p2522_p1 = pnand %p2521_p9, %p2515_p13 }
  0x4f   : > { %2525 = shalt.err (!%p2522_p1)
}
  0x50   : > { %s2526_s7 = scalar_lea.vmem %s2775_s22, 1024  ;;  %s2623_s12 = smov [#allocation2]  }
  0x51   : > { %p2527_p4 = scmp.ne.s32.totalorder %s2775_s22, %s2526_s7  ;;  %s2531_s27 = sshll.u32 %s2623_s12, 4  ;;  %s2532_s27 = int_to_ptr.vmem [resolvable:$false] %s2531_s27 }
  0x52   : > { %s2533_s28 = scalar_lea.vmem %s2532_s27, 2048  ;;  %p2534_p10 = scmp.lt.s32.totalorder %s2775_s22, %s2532_s27 }
  0x53   : > { %p2529_p5 = pnand %p2527_p4, %p2513_p11  ;;  %p2535_p12 = scmp.lt.s32.totalorder %s2533_s28, %s2526_s7 }
  0x55   : > { %p2530_p8 = pneg %p2529_p5  ;;  %p2536_p0 = por %p2535_p12, %p2534_p10 }
  0x57   : > { %p2537_p2 = pnand %p2536_p0, %p2530_p8 }
  0x59   : > { %2540 = shalt.err (!%p2537_p2)
}
  0x5a   : > { %2394 = dma.hbm_to_vmem [thread:$0]  (!%p2771_p7), %s2768_s26, 1024, %s2775_s22, %s2782_s29, %s2621_s9, %s2621_s9, %s2622_s10  }
  0x5b   : > { %s211_s30 = scalar_lea.vmem [#allocation4], %s2762_s11  ;;  %s207_s6 = sand.u32 1, %s2617_s18  }
  0x5c   : > { %s219_s24 = sshll.u32 %s211_s30, 4  ;;  %s2817_s13 = scalar_lea.sflag [#allocation5], %s207_s6  ;;  %s2815_s24 = int_to_ptr.vmem [resolvable:$true] %s219_s24 }
  0x5d   : > { %s2541_s14 = scalar_lea.hbm %s2780_s23, 1024  ;;  %s2546_s12 = scalar_lea.hbm %s3211_s1, 2048 }
  0x5e   : > { %p2542_p13 = scmp.ne.s32.totalorder %s2780_s23, %s2541_s14  ;;  %p2547_p9 = scmp.lt.u32.totalorder %s2780_s23, %s3211_s1 }
  0x5f   : > { %p2548_p1 = scmp.lt.u32.totalorder %s2546_s12, %s2541_s14  ;;  %p2550_p5 = scmp.lt.u32.totalorder %s2541_s14, %s2780_s23 }
  0x60   : > { %p2544_p3 = pnand %p2542_p13, %p2513_p11 }
  0x61   : > { %p2549_p4 = por %p2548_p1, %p2547_p9 }
  0x62   : > { %p2545_p6 = pneg %p2544_p3 }
  0x63   : > { %p2551_p8 = por %p2550_p5, %p2549_p4 }
  0x65   : > { %p2552_p10 = pnand %p2551_p8, %p2545_p6 }
  0x67   : > { %2555 = shalt.err (!%p2552_p10)
}
  0x68   : > { %s2556_s18 = scalar_lea.vmem %s2815_s24, 1024  ;;  %s2624_s11 = smov [#allocation4]  }
  0x69   : > { %p2557_p12 = scmp.ne.s32.totalorder %s2815_s24, %s2556_s18  ;;  %s2561_s26 = sshll.u32 %s2624_s11, 4  ;;  %s2562_s26 = int_to_ptr.vmem [resolvable:$false] %s2561_s26 }
  0x6a   : > { %s2563_s22 = scalar_lea.vmem %s2562_s26, 2048  ;;  %p2564_p13 = scmp.lt.s32.totalorder %s2815_s24, %s2562_s26 }
  0x6b   : > { %p2559_p0 = pnand %p2557_p12, %p2513_p11  ;;  %p2565_p3 = scmp.lt.s32.totalorder %s2563_s22, %s2556_s18 }
  0x6d   : > { %p2560_p2 = pneg %p2559_p0  ;;  %p2566_p9 = por %p2565_p3, %p2564_p13 }
  0x6f   : > { %p2567_p1 = pnand %p2566_p9, %p2560_p2 }
  0x71   : > { %2570 = shalt.err (!%p2567_p1)
}
  0x72   : > { %2397 = dma.hbm_to_vmem [thread:$0]  (!%p2771_p7), %s2780_s23, 1024, %s2815_s24, %s2817_s13, %s2621_s9, %s2621_s9, %s2622_s10  }
  0x73   : > { %p3222_p11 = scmp.ne.s32.totalorder %s3219_s21, 0 }
  0x74   : > { %s233_s29 = sand.u32 (!%p3222_p11), 1, %s2609_s16   ;;  %p3223_p6 = scmp.ne.s32.totalorder (!%p3222_p11), %s3218_s20, 0 }
  0x75   : > { %231 = sbr.rel (%p3222_p11) target bundleno = 673 (0x2a1), region = 36  ;;  %s1822_s30 = sshll.u32 (!%p3222_p11), %s233_s29, 6 }
  0x76   : > { %s234_s6 = scalar_lea.sflag (!%p3222_p11), [#allocation3], %s233_s29  ;;  %s2849_s14 = scalar_lea.vmem (!%p3222_p11), [#allocation2], %s1822_s30 }
  0x7c   : > { %2588 = dma.done.wait (%p3223_p6), %s234_s6, 1024  }
  0x7d   : > { %2590 = vsyncadd (%p3223_p6), %s234_s6, 4294966272  ;;  %s242_s25 = sand.u32 1, %s2669_s19   ;;  %s2856_s9 = scalar_lea.vmem [#allocation4], %s1822_s30 }
  0x7e   : > { %s243_s15 = scalar_lea.sflag [#allocation5], %s242_s25 }
  0x7f   : > { %2592 = dma.done.wait (%p3223_p6), %s243_s15, 1024  }
  0x80   : > { %2594 = vsyncadd (%p3223_p6), %s243_s15, 4294966272  ;;  %p3224_p7 = scmp.eq.s32.totalorder %s2669_s19, 0 }
  0x82   : > { %2596 = dma.done.wait (%p3224_p7), [#allocation5], 1024   ;;  %p3225_p4 = pmov %p3224_p7 }
  0x84   : > { %2598 = vsyncadd (%p3225_p4), [#allocation5], 4294966272  ;;  %p3226_p5 = pmov %p3225_p4 }
  0x85   : > { %p3227_p8 = pmov %p3225_p4 }
  0x86   : > { %2600 = dma.done.wait (%p3226_p5), [#allocation8], 256  }
  0x87   : > { %2602 = vsyncadd (%p3227_p8), [#allocation8], 4294967040  ;;  %vm310_vm0 = vcmask 130048   ;;  %v308_v0 = vld [vmem:[#allocation7] sm:$0xff]  ;;  %v309_v1 = vld [vmem:[#allocation7 + $0x8] sm:$0xff]  ;;  %vm448_vm1 = vcmask 523264  }
  0x88   : > { %v2871_v2 = vld [vmem:[%s2849_s14] sm:$0xff]  ;;  %v2873_v3 = vpack.c.bf16 %v309_v1, %v308_v0  ;;  %v2880_v4 = vld [vmem:[%s2849_s14 + $0x8] sm:$0xff]  ;;  %v2884_v5 = vld [vmem:[%s2849_s14 + $0x10] sm:$0xff]  ;;  %s1826_s20 = sshll.u32 %s2669_s19, 2 }
  0x89   : > { %2048 = vmatprep.mubr.msk.f32.mxu0 %vm310_vm0, %v2871_v2  ;;  %v2892_v6 = vld [vmem:[%s2849_s14 + $0x18] sm:$0xff]  ;;  %v2895_v7 = vld [vmem:[%s2849_s14 + $0x20] sm:$0xff]  ;;  %v2903_v8 = vld [vmem:[%s2849_s14 + $0x28] sm:$0xff]  ;;  %v812_v18 = vmul.f32 %v2871_v2, %v2871_v2  ;;  %v813_v20 = vmul.f32 %v2880_v4, %v2880_v4  ;;  %v814_v21 = vmul.f32 %v2884_v5, %v2884_v5  ;;  %p3157_p10 = scmp.lt.s32.totalorder %s1826_s20, 7 }
  0x8a   : > { %2265 = vmatprep.subr.bf16.mxu0 %v2873_v3  ;;  %v2906_v9 = vld [vmem:[%s2849_s14 + $0x30] sm:$0xff]  ;;  %v2913_v10 = vld [vmem:[%s2849_s14 + $0x38] sm:$0xff]  ;;  %v300_v11 = vld [vmem:[%s2856_s9] sm:$0xff]  ;;  %v815_v22 = vmul.f32 %v2892_v6, %v2892_v6  ;;  %v816_v23 = vmul.f32 %v2895_v7, %v2895_v7  ;;  %v817_v24 = vmul.f32 %v2903_v8, %v2903_v8 }
  0x8b   : > { %2267 = vmatpush3.bf16.msra.mxu0 %v2873_v3  ;;  %v301_v12 = vld [vmem:[%s2856_s9 + $0x8] sm:$0xff]  ;;  %v302_v13 = vld [vmem:[%s2856_s9 + $0x10] sm:$0xff]  ;;  %v303_v14 = vld [vmem:[%s2856_s9 + $0x18] sm:$0xff]  ;;  %v818_v25 = vmul.f32 %v2906_v9, %v2906_v9  ;;  %v819_v26 = vmul.f32 %v2913_v10, %v2913_v10  ;;  %v1054_v27 = vmul.f32 %v300_v11, %v300_v11  ;;  %v1296_v35 = vmul.f32 %v300_v11, %v2871_v2  ;;  %s3234_s20 = smov (!%p3157_p10, %s1826_s20), 7 }
  0x8c   : > { %2285 = vmatprep.subr.bf16.mxu0 %v2873_v3  ;;  %v304_v15 = vld [vmem:[%s2856_s9 + $0x20] sm:$0xff]  ;;  %v305_v16 = vld [vmem:[%s2856_s9 + $0x28] sm:$0xff]  ;;  %v306_v17 = vld [vmem:[%s2856_s9 + $0x30] sm:$0xff]  ;;  %v1055_v28 = vmul.f32 %v301_v12, %v301_v12  ;;  %v1056_v29 = vmul.f32 %v302_v13, %v302_v13  ;;  %v1057_v30 = vmul.f32 %v303_v14, %v303_v14  ;;  %v1297_v36 = vmul.f32 %v301_v12, %v2880_v4  ;;  %s1827_s19 = sshll.u32 %s3234_s20, 3 }
  0x8d   : > { %v307_v19 = vld [vmem:[%s2856_s9 + $0x38] sm:$0xff]  ;;  %v1058_v31 = vmul.f32 %v304_v15, %v304_v15  ;;  %v1059_v32 = vmul.f32 %v305_v16, %v305_v16  ;;  %v1060_v33 = vmul.f32 %v306_v17, %v306_v17  ;;  %v1298_v37 = vmul.f32 %v302_v13, %v2884_v5  ;;  %v2986_v43 = vld [vmem:[#allocation6] sm:$0xff]  ;;  %v2992_v58 = vld [vmem:[#allocation6 + $0x8] sm:$0xff]  ;;  %s290_s24 = scalar_lea.vmem %s3214_s4, %s1827_s19 }
  0x8e   : > { %2049 = vmatmul.mubr.msk.f32.vlgmr.msra.gmra.mrb[0].mxu0 %vm310_vm0, %v2880_v4  ;;  %v1061_v34 = vmul.f32 %v307_v19, %v307_v19  ;;  %v1299_v38 = vmul.f32 %v303_v14, %v2892_v6  ;;  %v1300_v39 = vmul.f32 %v304_v15, %v2895_v7  ;;  %v1301_v40 = vmul.f32 %v305_v16, %v2903_v8  ;;  %v2994_v60 = vld [vmem:[#allocation6 + $0x10] sm:$0xff]  ;;  %v3000_v63 = vld [vmem:[#allocation6 + $0x18] sm:$0xff]  ;;  %v3002_v1 = vld [vmem:[#allocation6 + $0x20] sm:$0xff] }
  0x8f   : > { %2287 = vmatpush3.bf16.msra.mxu0 %v2873_v3  ;;  %2051 = vmatprep.mubr.msk.f32.mxu0 %vm310_vm0, %v2884_v5  ;;  %v1302_v41 = vmul.f32 %v306_v17, %v2906_v9  ;;  %v1303_v42 = vmul.f32 %v307_v19, %v2913_v10  ;;  %v3008_v4 = vld [vmem:[#allocation6 + $0x28] sm:$0xff] }
  0x90   : > { %2305 = vmatprep.subr.bf16.mxu0 %v2873_v3  ;;  %2076 = vmatprep.mubr.msk.f32.mxu1 %vm448_vm1, %v2986_v43 }
  0x92   : > { %2052 = vmatmul.mubr.msk.f32.gmra.mrb[2].mxu0 %vm310_vm0, %v2892_v6  ;;  %v3010_v6 = vld [vmem:[#allocation6 + $0x30] sm:$0xff] }
  0x93   : > { %2054 = vmatprep.mubr.msk.f32.mxu0 %vm310_vm0, %v2895_v7 }
  0x96   : > { %2055 = vmatmul.mubr.msk.f32.gmra.mrb[4].mxu0 %vm310_vm0, %v2903_v8 }
  0x97   : > { %2057 = vmatprep.mubr.msk.f32.mxu0 %vm310_vm0, %v2906_v9  ;;  %v3016_v9 = vld [vmem:[#allocation6 + $0x38] sm:$0xff] }
  0x9a   : > { %2058 = vmatmul.mubr.msk.f32.gmra.mrb[6].mxu0 %vm310_vm0, %v2913_v10 }
  0x9b   : > { %2092 = vmatprep.mubr.msk.f32.mxu0 %vm310_vm0, %v300_v11 }
  0x9e   : > { %2093 = vmatmul.mubr.msk.f32.vlgmr.msra.gmra.mrb[8].mxu0 %vm310_vm0, %v301_v12 }
  0x9f   : > { %2307 = vmatpush3.bf16.msra.mxu0 %v2873_v3  ;;  %2095 = vmatprep.mubr.msk.f32.mxu0 %vm310_vm0, %v302_v13 }
  0xa0   : > { %2325 = vmatprep.subr.bf16.mxu0 %v2873_v3 }
  0xa2   : > { %2096 = vmatmul.mubr.msk.f32.gmra.mrb[10].mxu0 %vm310_vm0, %v303_v14 }
  0xa3   : > { %2098 = vmatprep.mubr.msk.f32.mxu0 %vm310_vm0, %v304_v15 }
  0xa6   : > { %2099 = vmatmul.mubr.msk.f32.gmra.mrb[12].mxu0 %vm310_vm0, %v305_v16 }
  0xa7   : > { %2101 = vmatprep.mubr.msk.f32.mxu0 %vm310_vm0, %v306_v17 }
  0xaa   : > { %2102 = vmatmul.mubr.msk.f32.gmra.mrb[14].mxu0 %vm310_vm0, %v307_v19 }
  0xab   : > { %2136 = vmatprep.mubr.msk.f32.mxu0 %vm310_vm0, %v812_v18 }
  0xae   : > { %2137 = vmatmul.mubr.msk.f32.vlgmr.msra.gmra.mrb[16].mxu0 %vm310_vm0, %v813_v20 }
  0xaf   : > { %2327 = vmatpush3.bf16.msra.mxu0 %v2873_v3  ;;  %2139 = vmatprep.mubr.msk.f32.mxu0 %vm310_vm0, %v814_v21 }
  0xb0   : > { %2345 = vmatprep.subr.bf16.mxu0 %v2873_v3 }
  0xb2   : > { %2140 = vmatmul.mubr.msk.f32.gmra.mrb[18].mxu0 %vm310_vm0, %v815_v22 }
  0xb3   : > { %2142 = vmatprep.mubr.msk.f32.mxu0 %vm310_vm0, %v816_v23 }
  0xb6   : > { %2143 = vmatmul.mubr.msk.f32.gmra.mrb[20].mxu0 %vm310_vm0, %v817_v24 }
  0xb7   : > { %2145 = vmatprep.mubr.msk.f32.mxu0 %vm310_vm0, %v818_v25 }
  0xba   : > { %2146 = vmatmul.mubr.msk.f32.gmra.mrb[22].mxu0 %vm310_vm0, %v819_v26 }
  0xbb   : > { %2180 = vmatprep.mubr.msk.f32.mxu0 %vm310_vm0, %v1054_v27 }
  0xbe   : > { %2181 = vmatmul.mubr.msk.f32.vlgmr.msra.gmra.mrb[24].mxu0 %vm310_vm0, %v1055_v28 }
  0xbf   : > { %2347 = vmatpush3.bf16.msra.mxu0 %v2873_v3  ;;  %2183 = vmatprep.mubr.msk.f32.mxu0 %vm310_vm0, %v1056_v29 }
  0xc2   : > { %2184 = vmatmul.mubr.msk.f32.gmra.mrb[26].mxu0 %vm310_vm0, %v1057_v30 }
  0xc3   : > { %2186 = vmatprep.mubr.msk.f32.mxu0 %vm310_vm0, %v1058_v31 }
  0xc6   : > { %2187 = vmatmul.mubr.msk.f32.gmra.mrb[28].mxu0 %vm310_vm0, %v1059_v32 }
  0xc7   : > { %2189 = vmatprep.mubr.msk.f32.mxu0 %vm310_vm0, %v1060_v33 }
  0xca   : > { %2190 = vmatmul.mubr.msk.f32.gmra.mrb[30].mxu0 %vm310_vm0, %v1061_v34 }
  0xcb   : > { %2224 = vmatprep.mubr.msk.f32.mxu0 %vm310_vm0, %v1296_v35 }
  0xce   : > { %2225 = vmatmul.mubr.msk.f32.vlgmr.msra.gmra.mrb[32].mxu0 %vm310_vm0, %v1297_v36 }
  0xcf   : > { %2227 = vmatprep.mubr.msk.f32.mxu0 %vm310_vm0, %v1298_v37 }
  0xd2   : > { %2228 = vmatmul.mubr.msk.f32.gmra.mrb[34].mxu0 %vm310_vm0, %v1299_v38 }
  0xd3   : > { %2230 = vmatprep.mubr.msk.f32.mxu0 %vm310_vm0, %v1300_v39 }
  0xd6   : > { %2231 = vmatmul.mubr.msk.f32.gmra.mrb[36].mxu0 %vm310_vm0, %v1301_v40 }
  0xd7   : > { %2233 = vmatprep.mubr.msk.f32.mxu0 %vm310_vm0, %v1302_v41 }
  0xda   : > { %2234 = vmatmul.mubr.msk.f32.gmra.mrb[38].mxu0 %vm310_vm0, %v1303_v42 }
  0xdb   : > { %2252 = vmatprep.mubr.msk.f32.mxu0 %vm448_vm1, %v2986_v43 }
 0x161   : > { %v2050_v44 = vpop.f32.mrb[0].mxu0 }
 0x162   : > { %v401_v45 = vpop.f32.mrb[1].mxu0 }
 0x163   : > { %v2268_v46 = vpack.c.bf16 %v2050_v44, %v401_v45 }
 0x165   : > { %v2053_v47 = vpop.f32.mrb[2].mxu0  ;;  %2269 = vmatprep.subr.bf16.mxu1 %v2268_v46 }
 0x166   : > { %v411_v48 = vpop.f32.mrb[3].mxu0  ;;  %2271 = vmatpush3.bf16.msra.mxu1 %v2268_v46 }
 0x167   : > { %v2272_v49 = vpack.c.bf16 %v2053_v47, %v411_v48 }
 0x169   : > { %v2056_v50 = vpop.f32.mrb[4].mxu0  ;;  %2273 = vmatprep.subr.bf16.mxu1 %v2272_v49 }
 0x16a   : > { %v421_v51 = vpop.f32.mrb[5].mxu0  ;;  %2275 = vmatpush3.bf16.msra.mxu1 %v2272_v49 }
 0x16b   : > { %v2276_v52 = vpack.c.bf16 %v2056_v50, %v421_v51 }
 0x16d   : > { %v2059_v53 = vpop.f32.mrb[6].mxu0  ;;  %2277 = vmatprep.subr.bf16.mxu1 %v2276_v52 }
 0x16e   : > { %v431_v54 = vpop.f32.mrb[7].mxu0  ;;  %2279 = vmatpush3.bf16.msra.mxu1 %v2276_v52 }
 0x16f   : > { %v2280_v55 = vpack.c.bf16 %v2059_v53, %v431_v54 }
 0x171   : > { %2281 = vmatprep.subr.bf16.mxu1 %v2280_v55  ;;  %v2094_v56 = vpop.f32.mrb[8].mxu0 }
 0x172   : > { %2283 = vmatpush3.bf16.msra.mxu1 %v2280_v55  ;;  %v668_v57 = vpop.f32.mrb[9].mxu0 }
 0x173   : > { %v2288_v59 = vpack.c.bf16 %v2094_v56, %v668_v57 }
 0x175   : > { %2077 = vmatmul.mubr.msk.f32.vlgmr.msra.gmra.mrb[0].mxu1 %vm448_vm1, %v2992_v58  ;;  %v2097_v61 = vpop.f32.mrb[10].mxu0  ;;  %2289 = vmatprep.subr.bf16.mxu1 %v2288_v59 }
 0x176   : > { %v678_v62 = vpop.f32.mrb[11].mxu0  ;;  %2291 = vmatpush3.bf16.msra.mxu1 %v2288_v59  ;;  %2079 = vmatprep.mubr.msk.f32.mxu1 %vm448_vm1, %v2994_v60 }
 0x177   : > { %v2292_v0 = vpack.c.bf16 %v2097_v61, %v678_v62 }
 0x179   : > { %2080 = vmatmul.mubr.msk.f32.gmra.mrb[2].mxu1 %vm448_vm1, %v3000_v63  ;;  %v2100_v2 = vpop.f32.mrb[12].mxu0  ;;  %2293 = vmatprep.subr.bf16.mxu1 %v2292_v0 }
 0x17a   : > { %v688_v3 = vpop.f32.mrb[13].mxu0  ;;  %2295 = vmatpush3.bf16.msra.mxu1 %v2292_v0  ;;  %2082 = vmatprep.mubr.msk.f32.mxu1 %vm448_vm1, %v3002_v1 }
 0x17b   : > { %v2296_v5 = vpack.c.bf16 %v2100_v2, %v688_v3 }
 0x17d   : > { %2083 = vmatmul.mubr.msk.f32.gmra.mrb[4].mxu1 %vm448_vm1, %v3008_v4  ;;  %v2103_v7 = vpop.f32.mrb[14].mxu0  ;;  %2297 = vmatprep.subr.bf16.mxu1 %v2296_v5 }
 0x17e   : > { %v698_v8 = vpop.f32.mrb[15].mxu0  ;;  %2299 = vmatpush3.bf16.msra.mxu1 %v2296_v5  ;;  %2085 = vmatprep.mubr.msk.f32.mxu1 %vm448_vm1, %v3010_v6 }
 0x17f   : > { %v2300_v10 = vpack.c.bf16 %v2103_v7, %v698_v8 }
 0x181   : > { %2086 = vmatmul.mubr.msk.f32.gmra.mrb[6].mxu1 %vm448_vm1, %v3016_v9  ;;  %2301 = vmatprep.subr.bf16.mxu1 %v2300_v10  ;;  %v2138_v11 = vpop.f32.mrb[16].mxu0 }
 0x182   : > { %2303 = vmatpush3.bf16.msra.mxu1 %v2300_v10  ;;  %v910_v12 = vpop.f32.mrb[17].mxu0  ;;  %2120 = vmatprep.mubr.msk.f32.mxu1 %vm448_vm1, %v2986_v43 }
 0x183   : > { %v2308_v13 = vpack.c.bf16 %v2138_v11, %v910_v12 }
 0x185   : > { %2121 = vmatmul.mubr.msk.f32.vlgmr.msra.gmra.mrb[8].mxu1 %vm448_vm1, %v2992_v58  ;;  %v2141_v14 = vpop.f32.mrb[18].mxu0  ;;  %2309 = vmatprep.subr.bf16.mxu1 %v2308_v13 }
 0x186   : > { %v920_v15 = vpop.f32.mrb[19].mxu0  ;;  %2311 = vmatpush3.bf16.msra.mxu1 %v2308_v13  ;;  %2123 = vmatprep.mubr.msk.f32.mxu1 %vm448_vm1, %v2994_v60 }
 0x187   : > { %v2312_v16 = vpack.c.bf16 %v2141_v14, %v920_v15 }
 0x189   : > { %2124 = vmatmul.mubr.msk.f32.gmra.mrb[10].mxu1 %vm448_vm1, %v3000_v63  ;;  %v2144_v17 = vpop.f32.mrb[20].mxu0  ;;  %2313 = vmatprep.subr.bf16.mxu1 %v2312_v16 }
 0x18a   : > { %v930_v18 = vpop.f32.mrb[21].mxu0  ;;  %2315 = vmatpush3.bf16.msra.mxu1 %v2312_v16  ;;  %2126 = vmatprep.mubr.msk.f32.mxu1 %vm448_vm1, %v3002_v1 }
 0x18b   : > { %v2316_v19 = vpack.c.bf16 %v2144_v17, %v930_v18 }
 0x18d   : > { %2127 = vmatmul.mubr.msk.f32.gmra.mrb[12].mxu1 %vm448_vm1, %v3008_v4  ;;  %v2147_v20 = vpop.f32.mrb[22].mxu0  ;;  %2317 = vmatprep.subr.bf16.mxu1 %v2316_v19 }
 0x18e   : > { %v940_v21 = vpop.f32.mrb[23].mxu0  ;;  %2319 = vmatpush3.bf16.msra.mxu1 %v2316_v19  ;;  %2129 = vmatprep.mubr.msk.f32.mxu1 %vm448_vm1, %v3010_v6 }
 0x18f   : > { %v2320_v22 = vpack.c.bf16 %v2147_v20, %v940_v21 }
 0x191   : > { %2130 = vmatmul.mubr.msk.f32.gmra.mrb[14].mxu1 %vm448_vm1, %v3016_v9  ;;  %2321 = vmatprep.subr.bf16.mxu1 %v2320_v22  ;;  %v2182_v23 = vpop.f32.mrb[24].mxu0 }
 0x192   : > { %2323 = vmatpush3.bf16.msra.mxu1 %v2320_v22  ;;  %v1152_v24 = vpop.f32.mrb[25].mxu0  ;;  %2164 = vmatprep.mubr.msk.f32.mxu1 %vm448_vm1, %v2986_v43 }
 0x193   : > { %v2328_v25 = vpack.c.bf16 %v2182_v23, %v1152_v24 }
 0x195   : > { %2165 = vmatmul.mubr.msk.f32.vlgmr.msra.gmra.mrb[16].mxu1 %vm448_vm1, %v2992_v58  ;;  %v2185_v26 = vpop.f32.mrb[26].mxu0  ;;  %2329 = vmatprep.subr.bf16.mxu1 %v2328_v25 }
 0x196   : > { %v1162_v27 = vpop.f32.mrb[27].mxu0  ;;  %2331 = vmatpush3.bf16.msra.mxu1 %v2328_v25  ;;  %2167 = vmatprep.mubr.msk.f32.mxu1 %vm448_vm1, %v2994_v60 }
 0x197   : > { %v2332_v28 = vpack.c.bf16 %v2185_v26, %v1162_v27 }
 0x199   : > { %2168 = vmatmul.mubr.msk.f32.gmra.mrb[18].mxu1 %vm448_vm1, %v3000_v63  ;;  %v2188_v29 = vpop.f32.mrb[28].mxu0  ;;  %2333 = vmatprep.subr.bf16.mxu1 %v2332_v28 }
 0x19a   : > { %v1172_v30 = vpop.f32.mrb[29].mxu0  ;;  %2335 = vmatpush3.bf16.msra.mxu1 %v2332_v28  ;;  %2170 = vmatprep.mubr.msk.f32.mxu1 %vm448_vm1, %v3002_v1 }
 0x19b   : > { %v2336_v31 = vpack.c.bf16 %v2188_v29, %v1172_v30 }
 0x19d   : > { %2171 = vmatmul.mubr.msk.f32.gmra.mrb[20].mxu1 %vm448_vm1, %v3008_v4  ;;  %v2191_v32 = vpop.f32.mrb[30].mxu0  ;;  %2337 = vmatprep.subr.bf16.mxu1 %v2336_v31 }
 0x19e   : > { %v1182_v33 = vpop.f32.mrb[31].mxu0  ;;  %2339 = vmatpush3.bf16.msra.mxu1 %v2336_v31  ;;  %2173 = vmatprep.mubr.msk.f32.mxu1 %vm448_vm1, %v3010_v6 }
 0x19f   : > { %v2340_v34 = vpack.c.bf16 %v2191_v32, %v1182_v33 }
 0x1a1   : > { %2174 = vmatmul.mubr.msk.f32.gmra.mrb[22].mxu1 %vm448_vm1, %v3016_v9  ;;  %2341 = vmatprep.subr.bf16.mxu1 %v2340_v34  ;;  %v2226_v35 = vpop.f32.mrb[32].mxu0 }
 0x1a2   : > { %2343 = vmatpush3.bf16.msra.mxu1 %v2340_v34  ;;  %v1394_v36 = vpop.f32.mrb[33].mxu0  ;;  %2208 = vmatprep.mubr.msk.f32.mxu1 %vm448_vm1, %v2986_v43 }
 0x1a3   : > { %v2348_v37 = vpack.c.bf16 %v2226_v35, %v1394_v36 }
 0x1a5   : > { %2209 = vmatmul.mubr.msk.f32.vlgmr.msra.gmra.mrb[24].mxu1 %vm448_vm1, %v2992_v58  ;;  %v2229_v38 = vpop.f32.mrb[34].mxu0  ;;  %2349 = vmatprep.subr.bf16.mxu0 %v2348_v37 }
 0x1a6   : > { %2364 = vmatprep.subr.bf16.mxu1 %v2348_v37  ;;  %v1404_v39 = vpop.f32.mrb[35].mxu0  ;;  %2351 = vmatpush3.bf16.msra.mxu0 %v2348_v37 }
 0x1a7   : > { %v2352_v40 = vpack.c.bf16 %v2229_v38, %v1404_v39  ;;  %2368 = vmatpush3.bf16.msra.mxu1 %v2348_v37  ;;  %2211 = vmatprep.mubr.msk.f32.mxu1 %vm448_vm1, %v2994_v60 }
 0x1a9   : > { %2212 = vmatmul.mubr.msk.f32.gmra.mrb[26].mxu1 %vm448_vm1, %v3000_v63  ;;  %v2232_v41 = vpop.f32.mrb[36].mxu0  ;;  %2353 = vmatprep.subr.bf16.mxu0 %v2352_v40 }
 0x1aa   : > { %2365 = vmatprep.subr.bf16.mxu1 %v2352_v40  ;;  %v1414_v42 = vpop.f32.mrb[37].mxu0  ;;  %2355 = vmatpush3.bf16.msra.mxu0 %v2352_v40 }
 0x1ab   : > { %v2356_v43 = vpack.c.bf16 %v2232_v41, %v1414_v42  ;;  %2369 = vmatpush3.bf16.msra.mxu1 %v2352_v40  ;;  %2214 = vmatprep.mubr.msk.f32.mxu1 %vm448_vm1, %v3002_v1 }
 0x1ad   : > { %2215 = vmatmul.mubr.msk.f32.gmra.mrb[28].mxu1 %vm448_vm1, %v3008_v4  ;;  %v2235_v44 = vpop.f32.mrb[38].mxu0  ;;  %2357 = vmatprep.subr.bf16.mxu0 %v2356_v43 }
 0x1ae   : > { %2366 = vmatprep.subr.bf16.mxu1 %v2356_v43  ;;  %v1424_v45 = vpop.f32.mrb[39].mxu0  ;;  %2359 = vmatpush3.bf16.msra.mxu0 %v2356_v43 }
 0x1af   : > { %v2360_v46 = vpack.c.bf16 %v2235_v44, %v1424_v45  ;;  %2370 = vmatpush3.bf16.msra.mxu1 %v2356_v43  ;;  %2217 = vmatprep.mubr.msk.f32.mxu1 %vm448_vm1, %v3010_v6 }
 0x1b1   : > { %2218 = vmatmul.mubr.msk.f32.gmra.mrb[30].mxu1 %vm448_vm1, %v3016_v9  ;;  %2361 = vmatprep.subr.bf16.mxu0 %v2360_v46 }
 0x1b2   : > { %2367 = vmatprep.subr.bf16.mxu1 %v2360_v46  ;;  %2363 = vmatpush3.bf16.msra.mxu0 %v2360_v46 }
 0x1b3   : > { %2371 = vmatpush3.bf16.msra.mxu1 %v2360_v46  ;;  %2255 = vmatprep.mubr.msk.f32.mxu1 %vm448_vm1, %v2994_v60 }
 0x1b5   : > { %2253 = vmatmul.mubr.msk.f32.vlgmr.msra.gmra.mrb[40].mxu0 %vm448_vm1, %v2992_v58 }
 0x1b6   : > { %2256 = vmatmul.mubr.msk.f32.vlgmr.msra.gmra.mrb[32].mxu1 %vm448_vm1, %v3000_v63 }
 0x1b7   : > { %2258 = vmatprep.mubr.msk.f32.mxu1 %vm448_vm1, %v3002_v1 }
 0x1ba   : > { %2259 = vmatmul.mubr.msk.f32.gmra.mrb[34].mxu1 %vm448_vm1, %v3008_v4 }
 0x1bb   : > { %2261 = vmatprep.mubr.msk.f32.mxu1 %vm448_vm1, %v3010_v6 }
 0x1be   : > { %2262 = vmatmul.mubr.msk.f32.gmra.mrb[36].mxu1 %vm448_vm1, %v3016_v9 }
 0x248   : > { %v2078_v47 = vpop.f32.mrb[0].mxu1 }
 0x249   : > { %v539_v48 = vpop.f32.mrb[1].mxu1  ;;  %v1539_v56 = vmul.f32 %v2078_v47, %v2078_v47 }
 0x24a   : > { %v1538_v60 = vmul.f32 %v539_v48, %v539_v48 }
 0x24c   : > { %v2081_v49 = vpop.f32.mrb[2].mxu1 }
 0x24d   : > { %v549_v50 = vpop.f32.mrb[3].mxu1  ;;  %v3086_v2 = vmul.f32 %v2081_v49, %v2081_v49 }
 0x24e   : > { %v1540_v6 = vmul.f32 %v549_v50, %v549_v50 }
 0x250   : > { %v2084_v51 = vpop.f32.mrb[4].mxu1 }
 0x251   : > { %v559_v52 = vpop.f32.mrb[5].mxu1  ;;  %v3093_v12 = vmul.f32 %v2084_v51, %v2084_v51 }
 0x252   : > { %v3099_v16 = vmul.f32 %v559_v52, %v559_v52 }
 0x254   : > { %v2087_v53 = vpop.f32.mrb[6].mxu1 }
 0x255   : > { %v569_v54 = vpop.f32.mrb[7].mxu1  ;;  %v3113_v22 = vmul.f32 %v2087_v53, %v2087_v53 }
 0x256   : > { %v3119_v26 = vmul.f32 %v569_v54, %v569_v54 }
 0x258   : > { %v2122_v55 = vpop.f32.mrb[8].mxu1 }
 0x259   : > { %v1547_v57 = vmul.f32 %v2122_v55, %v2122_v55  ;;  %v3082_v58 = vmul.f32 %v2122_v55, %v2078_v47  ;;  %v773_v59 = vpop.f32.mrb[9].mxu1 }
 0x25a   : > { %v1546_v61 = vmul.f32 %v773_v59, %v773_v59  ;;  %v3084_v62 = vmul.f32 %v773_v59, %v539_v48 }
 0x25b   : > { %v1627_v63 = vadd.f32 %v1547_v57, %v1539_v56 }
 0x25c   : > { %v1626_v0 = vadd.f32 %v1546_v61, %v1538_v60  ;;  %v2125_v1 = vpop.f32.mrb[10].mxu1 }
 0x25d   : > { %v1549_v3 = vmul.f32 %v2125_v1, %v2125_v1  ;;  %v3088_v4 = vmul.f32 %v2125_v1, %v2081_v49  ;;  %v783_v5 = vpop.f32.mrb[11].mxu1 }
 0x25e   : > { %v1548_v7 = vmul.f32 %v783_v5, %v783_v5  ;;  %v3090_v8 = vmul.f32 %v783_v5, %v549_v50  ;;  %v1634_v1 = vadd.f32 0.0001, %v1626_v0 }
 0x25f   : > { %v1629_v9 = vadd.f32 %v1549_v3, %v3086_v2 }
 0x260   : > { %v1628_v10 = vadd.f32 %v1548_v7, %v1540_v6  ;;  %v2128_v11 = vpop.f32.mrb[12].mxu1 }
 0x261   : > { %v3095_v13 = vmul.f32 %v2128_v11, %v2128_v11  ;;  %v3097_v14 = vmul.f32 %v2128_v11, %v2084_v51  ;;  %v793_v15 = vpop.f32.mrb[13].mxu1 }
 0x262   : > { %v3101_v17 = vmul.f32 %v793_v15, %v793_v15  ;;  %v3103_v18 = vmul.f32 %v793_v15, %v559_v52 }
 0x263   : > { %v3107_v19 = vadd.f32 %v3095_v13, %v3093_v12 }
 0x264   : > { %v3111_v20 = vadd.f32 %v3101_v17, %v3099_v16  ;;  %v2131_v21 = vpop.f32.mrb[14].mxu1 }
 0x265   : > { %v3115_v23 = vmul.f32 %v2131_v21, %v2131_v21  ;;  %v3117_v24 = vmul.f32 %v2131_v21, %v2087_v53  ;;  %v803_v25 = vpop.f32.mrb[15].mxu1 }
 0x266   : > { %v3121_v27 = vmul.f32 %v803_v25, %v803_v25  ;;  %v3123_v28 = vmul.f32 %v803_v25, %v569_v54  ;;  %v1635_v54 = vadd.f32 0.0001, %v1627_v63 }
 0x267   : > { %v3127_v29 = vadd.f32 %v3115_v23, %v3113_v22 }
 0x268   : > { %v3131_v30 = vadd.f32 %v3121_v27, %v3119_v26  ;;  %v2166_v31 = vpop.f32.mrb[16].mxu1 }
 0x269   : > { %v1563_v32 = vsub.f32 %v2166_v31, %v1539_v56  ;;  %v1015_v33 = vpop.f32.mrb[17].mxu1  ;;  %v1589_v31 = vmul.f32 2.0, %v3088_v4 }
 0x26a   : > { %v1562_v34 = vsub.f32 %v1015_v33, %v1538_v60  ;;  %v1587_v60 = vmul.f32 2.0, %v3082_v58 }
 0x26c   : > { %v2169_v35 = vpop.f32.mrb[18].mxu1  ;;  %v3141_v25 = vadd.f32 0.0001, %v1587_v60 }
 0x26d   : > { %v1565_v36 = vsub.f32 %v2169_v35, %v3086_v2  ;;  %v1025_v37 = vpop.f32.mrb[19].mxu1 }
 0x26e   : > { %v1564_v38 = vsub.f32 %v1025_v37, %v1540_v6  ;;  %v1586_v6 = vmul.f32 2.0, %v3084_v62 }
 0x270   : > { %v2172_v39 = vpop.f32.mrb[20].mxu1 }
 0x271   : > { %v1567_v40 = vsub.f32 %v2172_v39, %v3093_v12  ;;  %v1035_v41 = vpop.f32.mrb[21].mxu1 }
 0x272   : > { %v1566_v42 = vsub.f32 %v1035_v41, %v3099_v16  ;;  %v1597_v41 = vadd.f32 0.0001, %v1589_v31 }
 0x274   : > { %v2175_v43 = vpop.f32.mrb[22].mxu1 }
 0x275   : > { %v1569_v44 = vsub.f32 %v2175_v43, %v3113_v22  ;;  %v1045_v45 = vpop.f32.mrb[23].mxu1 }
 0x276   : > { %v1568_v46 = vsub.f32 %v1045_v45, %v3119_v26  ;;  %v1591_v45 = vmul.f32 2.0, %v3097_v14 }
 0x278   : > { %v2210_v47 = vpop.f32.mrb[24].mxu1 }
 0x279   : > { %v1571_v48 = vsub.f32 %v2210_v47, %v1547_v57  ;;  %v1257_v49 = vpop.f32.mrb[25].mxu1 }
 0x27a   : > { %v1570_v50 = vsub.f32 %v1257_v49, %v1546_v61  ;;  %v1637_v61 = vadd.f32 0.0001, %v1629_v9 }
 0x27b   : > { %v1643_v51 = vadd.f32 %v1571_v48, %v1563_v32 }
 0x27c   : > { %v1642_v52 = vadd.f32 %v1570_v50, %v1562_v34  ;;  %v2213_v53 = vpop.f32.mrb[26].mxu1  ;;  %v1588_v34 = vmul.f32 2.0, %v3090_v8 }
 0x27d   : > { %v1651_v55 = vadd.f32 0.0009, %v1643_v51  ;;  %v1573_v56 = vsub.f32 %v2213_v53, %v1549_v3  ;;  %v1267_v59 = vpop.f32.mrb[27].mxu1  ;;  %v1636_v3 = vadd.f32 0.0001, %v1628_v10  ;;  %v1590_v53 = vmul.f32 2.0, %v3103_v18 }
 0x27e   : > { %v1650_v2 = vadd.f32 0.0009, %v1642_v52  ;;  %v1572_v5 = vsub.f32 %v1267_v59, %v1548_v7  ;;  %v3144_v7 = vadd.f32 0.0001, %v1586_v6 }
 0x27f   : > { %v1659_v11 = vmul.f32 %v1651_v55, %v1635_v54  ;;  %v1645_v12 = vadd.f32 %v1573_v56, %v1565_v36  ;;  %v1639_v36 = vadd.f32 0.0001, %v3107_v19  ;;  %v1641_v19 = vadd.f32 0.0001, %v3127_v29 }
 0x280   : > { %v1658_v15 = vmul.f32 %v1650_v2, %v1634_v1  ;;  %v1644_v57 = vadd.f32 %v1572_v5, %v1564_v38  ;;  %v2216_v16 = vpop.f32.mrb[28].mxu1  ;;  %v1638_v38 = vadd.f32 0.0001, %v3111_v20  ;;  %v1640_v20 = vadd.f32 0.0001, %v3131_v30 }
 0x281   : > { %v1653_v21 = vadd.f32 0.0009, %v1645_v12  ;;  %v1575_v22 = vsub.f32 %v2216_v16, %v3095_v13  ;;  %v1277_v63 = vpop.f32.mrb[29].mxu1  ;;  %2439 = vrcp.f32 %v1659_v11  ;;  %v1596_v56 = vadd.f32 0.0001, %v1588_v34 }
 0x282   : > { %v1652_v26 = vadd.f32 0.0009, %v1644_v57  ;;  %v1574_v0 = vsub.f32 %v1277_v63, %v3101_v17  ;;  %v1599_v1 = vadd.f32 0.0001, %v1591_v45  ;;  %v1598_v57 = vadd.f32 0.0001, %v1590_v53 }
 0x283   : > { %v1661_v32 = vmul.f32 %v1653_v21, %v1637_v61  ;;  %v1647_v33 = vadd.f32 %v1575_v22, %v1567_v40  ;;  %v1593_v63 = vmul.f32 2.0, %v3117_v24 }
 0x284   : > { %v1660_v9 = vmul.f32 %v1652_v26, %v1636_v3  ;;  %v1646_v35 = vadd.f32 %v1574_v0, %v1566_v42  ;;  %v2219_v13 = vpop.f32.mrb[30].mxu1 }
 0x285   : > { %2441 = vrcp.f32 %v1661_v32  ;;  %v1655_v10 = vadd.f32 0.0009, %v1647_v33  ;;  %v1577_v37 = vsub.f32 %v2219_v13, %v3115_v23  ;;  %v1287_v17 = vpop.f32.mrb[31].mxu1  ;;  %v1592_v32 = vmul.f32 2.0, %v3123_v28 }
 0x286   : > { %2443 = vrcp.f32 %v1660_v9  ;;  %v1654_v39 = vadd.f32 0.0009, %v1646_v35  ;;  %v1576_v40 = vsub.f32 %v1287_v17, %v3121_v27 }
 0x287   : > { %2445 = vrcp.f32 %v1658_v15  ;;  %v1663_v43 = vmul.f32 %v1655_v10, %v1639_v36  ;;  %v1649_v42 = vadd.f32 %v1577_v37, %v1569_v44 }
 0x288   : > { %v1662_v47 = vmul.f32 %v1654_v39, %v1638_v38  ;;  %v1648_v48 = vadd.f32 %v1576_v40, %v1568_v46  ;;  %v2254_v23 = vpop.f32.mrb[40].mxu0 }
 0x289   : > { %2447 = vrcp.f32 %v1663_v43  ;;  %v1657_v27 = vadd.f32 0.0009, %v1649_v42  ;;  %v1579_v44 = vsub.f32 %v2254_v23, %v3082_v58  ;;  %v2257_v49 = vpop.f32.mrb[32].mxu1  ;;  %v1499_v50 = vpop.f32.mrb[41].mxu0 }
 0x28a   : > { %2449 = vrcp.f32 %v1662_v47  ;;  %v1656_v29 = vadd.f32 0.0009, %v1648_v48  ;;  %v1581_v46 = vsub.f32 %v2257_v49, %v3088_v4  ;;  %v1578_v51 = vsub.f32 %v1499_v50, %v3084_v62  ;;  %v1509_v52 = vpop.f32.mrb[33].mxu1 }
 0x28b   : > { %v1665_v54 = vmul.f32 %v1657_v27, %v1641_v19  ;;  %v1603_v55 = vmul.f32 2.0, %v1579_v44  ;;  %v1580_v30 = vsub.f32 %v1509_v52, %v3090_v8  ;;  %v2440_v5 = vpop.eup %2439  ;;  %v1601_v48 = vadd.f32 0.0001, %v1593_v63 }
 0x28c   : > { %v1664_v59 = vmul.f32 %v1656_v29, %v1640_v20  ;;  %v1605_v60 = vmul.f32 2.0, %v1581_v46  ;;  %v1602_v58 = vmul.f32 2.0, %v1578_v51  ;;  %v1600_v44 = vadd.f32 0.0001, %v1592_v32 }
 0x28d   : > { %2451 = vrcp.f32 %v1665_v54  ;;  %v1611_v4 = vadd.f32 0.0009, %v1603_v55  ;;  %v1604_v2 = vmul.f32 2.0, %v1580_v30  ;;  %v2260_v62 = vpop.f32.mrb[34].mxu1 }
 0x28e   : > { %2453 = vrcp.f32 %v1664_v59  ;;  %v1613_v6 = vadd.f32 0.0009, %v1605_v60  ;;  %v1610_v11 = vadd.f32 0.0009, %v1602_v58  ;;  %v1583_v8 = vsub.f32 %v2260_v62, %v3097_v14  ;;  %v1519_v12 = vpop.f32.mrb[35].mxu1 }
 0x28f   : > { %v2442_v15 = vpop.eup %2441  ;;  %v1619_v16 = vmul.f32 %v1611_v4, %v3141_v25  ;;  %v1612_v61 = vadd.f32 0.0009, %v1604_v2  ;;  %v1582_v21 = vsub.f32 %v1519_v12, %v3103_v18 }
 0x290   : > { %v2444_v22 = vpop.eup %2443  ;;  %v1621_v3 = vmul.f32 %v1613_v6, %v1597_v41  ;;  %v1618_v26 = vmul.f32 %v1610_v11, %v3144_v7  ;;  %v1607_v0 = vmul.f32 2.0, %v1583_v8 }
 0x291   : > { %v2446_v31 = vpop.eup %2445  ;;  %v1669_v33 = vmul.f32 %v2440_v5, %v1619_v16  ;;  %v1620_v14 = vmul.f32 %v1612_v61, %v1596_v56  ;;  %v1606_v34 = vmul.f32 2.0, %v1582_v21  ;;  %v2263_v9 = vpop.f32.mrb[36].mxu1 }
 0x292   : > { %v1673_v35 = vmul.f32 %v2442_v15, %v1621_v3  ;;  %v1667_v25 = vmul.f32 %v2446_v31, %v1618_v26  ;;  %v1615_v13 = vadd.f32 0.0009, %v1607_v0  ;;  %v1585_v18 = vsub.f32 %v2263_v9, %v3117_v24  ;;  %v1529_v36 = vpop.f32.mrb[37].mxu1 }
 0x293   : > { %v2448_v10 = vpop.eup %2447  ;;  %v1683_v37 = vsel %vm310_vm0, %v1669_v33, 0.0  ;;  %v1671_v17 = vmul.f32 %v2444_v22, %v1620_v14  ;;  %v1614_v7 = vadd.f32 0.0009, %v1606_v34  ;;  %v1584_v38 = vsub.f32 %v1529_v36, %v3123_v28 }
 0x294   : > { %v2450_v39 = vpop.eup %2449  ;;  %v1686_v40 = vsel %vm310_vm0, %v1673_v35, 0.0  ;;  %v1682_v41 = vsel %vm310_vm0, %v1667_v25, 0.0  ;;  %v1623_v43 = vmul.f32 %v1615_v13, %v1599_v1  ;;  %v1609_v42 = vmul.f32 2.0, %v1585_v18 }
 0x295   : > { %v1684_v24 = vadd.f32 %v1683_v37, %v1682_v41  ;;  %v1685_v45 = vsel %vm310_vm0, %v1671_v17, 0.0  ;;  %v1622_v19 = vmul.f32 %v1614_v7, %v1598_v57  ;;  %v1608_v47 = vmul.f32 2.0, %v1584_v38 }
 0x296   : > { %v1687_v23 = vadd.f32 %v1686_v40, %v1685_v45  ;;  %v1677_v20 = vmul.f32 %v2448_v10, %v1623_v43  ;;  %v1617_v28 = vadd.f32 0.0009, %v1609_v42 }
 0x297   : > { %v2452_v27 = vpop.eup %2451  ;;  %1694 = vst.msk [vmem:[%s290_s24] sm:$0xff] %vm310_vm0, %v1684_v24  ;;  %v1675_v49 = vmul.f32 %v2450_v39, %v1622_v19  ;;  %v1616_v50 = vadd.f32 0.0009, %v1608_v47 }
 0x298   : > { %v2454_v29 = vpop.eup %2453  ;;  %1695 = vst.msk [vmem:[%s290_s24 + $0x8] sm:$0xff] %vm310_vm0, %v1687_v23  ;;  %v1689_v46 = vsel %vm310_vm0, %v1677_v20, 0.0  ;;  %v1625_v51 = vmul.f32 %v1617_v28, %v1601_v48 }
 0x299   : > { %v1688_v52 = vsel %vm310_vm0, %v1675_v49, 0.0  ;;  %v1624_v53 = vmul.f32 %v1616_v50, %v1600_v44 }
 0x29a   : > { %v1690_v54 = vadd.f32 %v1689_v46, %v1688_v52  ;;  %v1681_v55 = vmul.f32 %v2452_v27, %v1625_v51 }
 0x29b   : > { %v1679_v30 = vmul.f32 %v2454_v29, %v1624_v53 }
 0x29c   : > { %1696 = vst.msk [vmem:[%s290_s24 + $0x10] sm:$0xff] %vm310_vm0, %v1690_v54  ;;  %v1692_v56 = vsel %vm310_vm0, %v1681_v55, 0.0 }
 0x29d   : > { %v1691_v59 = vsel %vm310_vm0, %v1679_v30, 0.0 }
 0x29e   : > { %v1693_v60 = vadd.f32 %v1692_v56, %v1691_v59 }
 0x2a0   : > { %1697 = vst.msk [vmem:[%s290_s24 + $0x18] sm:$0xff] %vm310_vm0, %v1693_v60 }
 0x2a1 PF: > { %p18_p12 = scmp.ge.s32.totalorder %s2749_s5, 4   ;;  %s3229_s15 = smov %s2609_s16 }
 0x2a2   : > { %s3230_s16 = smov %s2613_s17  ;;  %s3231_s17 = smov %s2760_s8 }
 0x2a3   : > { %s3232_s18 = smov %s2749_s5  ;;  %20 = sbr.rel (!%p18_p12) target bundleno = 6 (0x6), region = 97 }
 0x2aa   :  { %1720 = vsyncpa [#allocation3], 1 }
 0x2ab   :  { %1722 = vsyncpa [#allocation3 + $0x1], 1 }
 0x2ac   :  { %1723 = vsyncpa [#allocation5], 1 }
 0x2ad   :  { %1725 = vsyncpa [#allocation5 + $0x1], 1 }
 0x2ae   :  { %1726 = vsyncpa [#allocation8], 1 }

</bundles_post_ra>
